<compile_context>
chip_gen: v7x
topology: tpu7x:2x2x1
jax: 0.10.0
libtpu: 0.0.40
codegen_flags: <defaults>
</compile_context>

<pallas_src>
import math

import jax
import jax.numpy as jnp
from jax.experimental import pallas as pl
from jax.experimental.pallas import tpu as pltpu

_C1 = math.sqrt(2.0 / math.pi)      # sqrt(2/pi)
_C2 = _C1 * 0.044715                # sqrt(2/pi) * 0.044715

_WIDE_CANDIDATES = (4096, 2048, 1024, 512, 256, 128)


def _tpu_generation() -> int:
    try:
        kind = jax.devices()[0].device_kind.lower()
    except Exception:
        return 0
    for g in (7, 6, 5, 4):
        if f"v{g}" in kind:
            return g
    return 0


_GEN = _tpu_generation()


def _sublane_multiple(dtype) -> int:
    itemsize = jnp.dtype(dtype).itemsize
    if itemsize >= 4:
        return 8
    if itemsize == 2:
        return 16
    return 32


def _round_up(v: int, m: int) -> int:
    return ((v + m - 1) // m) * m


def _compute_dtype(dtype):
    # bf16-native math on v6e/v7x (native bf16 VPU + EUP); f32 everywhere else.
    if jnp.dtype(dtype) == jnp.dtype(jnp.bfloat16) and _GEN >= 6:
        return jnp.bfloat16
    return jnp.float32


def _target_block_bytes() -> int:
    # v7x / v6e: bigger blocks amortize the ~0.35us per-grid-step overhead and
    # still fit comfortably double-buffered (2 bufs x (in+out) x 4 MiB = 16 MiB).
    if _GEN >= 6:
        return 4 * 1024 * 1024
    return 2 * 1024 * 1024


def _make_gelu_kernel(compute_dtype):
    def kernel(x_ref, o_ref):
        x = x_ref[...].astype(compute_dtype)
        # Horner form with pre-folded constants (fewer VALU ops; no f32 FMA on
        # v5e/v6e so every mul/add is a real slot).
        inner = x * (_C1 + _C2 * (x * x))
        h = 0.5 * x
        o_ref[...] = (h + h * jnp.tanh(inner)).astype(o_ref.dtype)

    return kernel


def _gelu_jnp(x):
    """Plain-jnp fallback for the tiny (<128 element) ragged tail."""
    cd = _compute_dtype(x.dtype)
    xf = x.astype(cd)
    h = 0.5 * xf
    y = h + h * jnp.tanh(xf * (_C1 + _C2 * (xf * xf)))
    return y.astype(x.dtype)


def _gelu_pallas_flat(x_flat):
    """Run the Pallas kernel on a 1-D array whose size is a multiple of 128."""
    n = x_flat.size
    dtype = x_flat.dtype
    sub = _sublane_multiple(dtype)
    itemsize = jnp.dtype(dtype).itemsize

    # Widest lane-dense width that divides the flat size exactly (pure bitcast
    # view); prefer a width that still gives >= one full sublane group of rows.
    wide = None
    for cand in _WIDE_CANDIDATES:
        if n % cand == 0 and n // cand >= sub:
            wide = cand
            break
    if wide is None:
        for cand in _WIDE_CANDIDATES:
            if n % cand == 0:
                wide = cand
                break
    assert wide is not None  # guaranteed: n is a multiple of 128

    rows = n // wide
    x2 = x_flat.reshape(rows, wide)

    # Full-width blocks; row count targets the per-generation block size and is
    # a multiple of the dtype-native sublane count (8/16/32).
    br = _target_block_bytes() // (wide * itemsize)
    br = max(sub, (br // sub) * sub)
    if _GEN >= 7 and rows >= 2 * sub:
        # v7x has 2 TensorCores: keep the grid >= 2 steps so the "parallel"
        # axis actually has work to shard.
        half = _round_up(pl.cdiv(rows, 2), sub)
        br = min(br, half)
    if rows <= br:
        br = rows  # full-extent row block is always a legal block shape
    grid = (pl.cdiv(rows, br),)

    cparams = dict(dimension_semantics=("parallel",))
    if _GEN >= 7:
        cparams["vmem_limit_bytes"] = 28 * 1024 * 1024

    out2 = pl.pallas_call(
        _make_gelu_kernel(_compute_dtype(dtype)),
        out_shape=jax.ShapeDtypeStruct((rows, wide), dtype),
        grid_spec=pltpu.PrefetchScalarGridSpec(
            num_scalar_prefetch=0,
            grid=grid,
            in_specs=[pl.BlockSpec((br, wide), lambda i: (i, 0))],
            out_specs=pl.BlockSpec((br, wide), lambda i: (i, 0)),
        ),
        compiler_params=pltpu.CompilerParams(**cparams),
    )(x2)
    return out2.reshape(-1)


def gelu(x: jnp.ndarray) -> jnp.ndarray:
    """Elementwise tanh-approx GELU (matches the PyTorch module's formula)."""
    orig_shape = x.shape
    n = x.size
    if n == 0:
        return x

    x_flat = x.reshape(-1)  # free for contiguous layouts
    if n % 128 == 0:
        out_flat = _gelu_pallas_flat(x_flat)
    else:
        # Ragged case: Pallas on the 128-aligned prefix, jnp on the tiny tail.
        prefix = (n // 128) * 128
        if prefix == 0:
            out_flat = _gelu_jnp(x_flat)
        else:
            head = _gelu_pallas_flat(x_flat[:prefix])
            tail = _gelu_jnp(x_flat[prefix:])
            out_flat = jnp.concatenate([head, tail])
    return out_flat.reshape(orig_shape)


def _gelu_ref(x):
    xf = x.astype(jnp.float32)
    y = 0.5 * xf * (1.0 + jnp.tanh(_C1 * (xf + 0.044715 * xf * xf * xf)))
    return y.astype(x.dtype)


if __name__ == "__main__":
    key = jax.random.PRNGKey(0)
    # Small NCHW-like input, matching a typical PyTorch layout.
    x = jax.random.normal(key, (2, 4, 16, 16), dtype=jnp.float32)

    y = jax.block_until_ready(gelu(x))
    y_ref = _gelu_ref(x)
    assert y.shape == x.shape and y.dtype == x.dtype
    assert jnp.allclose(y, y_ref, atol=1e-6, rtol=1e-5), "f32 mismatch vs reference"

    # Secondary check: bf16 I/O path (bf16-native compute on v6e/v7x, f32 on v5e).
    x_bf16 = x.astype(jnp.bfloat16)
    y_bf16 = jax.block_until_ready(gelu(x_bf16))
    y_bf16_ref = _gelu_ref(x_bf16)
    assert y_bf16.shape == x.shape and y_bf16.dtype == jnp.bfloat16
    assert jnp.allclose(
        y_bf16.astype(jnp.float32), y_bf16_ref.astype(jnp.float32), atol=2e-2, rtol=2e-2
    ), "bf16 mismatch vs reference"

    # Ragged-size path (not a multiple of 128): prefix kernel + jnp tail.
    x_rag = jax.random.normal(jax.random.PRNGKey(1), (3, 5, 13), dtype=jnp.float32)
    y_rag = jax.block_until_ready(gelu(x_rag))
    assert y_rag.shape == x_rag.shape
    assert jnp.allclose(y_rag, _gelu_ref(x_rag), atol=1e-6, rtol=1e-5), "ragged mismatch"

    print("KERNEL_OK")
</pallas_src>

<mosaic_0001>
module attributes {stable_mosaic.version = 11 : i64} {
  func.func @kernel(%arg0: i32, %arg1: memref<8x256xf32, #tpu.memory_space<vmem>>, %arg2: memref<8x256xf32, #tpu.memory_space<vmem>>) attributes {dimension_semantics = [#tpu.dimension_semantics<parallel>], iteration_bounds = array<i64: 1>, scalar_prefetch = 0 : i64, scratch_operands = 0 : i64, tpu.core_type = #tpu.core_type<tc>, window_params = [{transform_indices = @transform_0, window_bounds = array<i64: 8, 256>}, {transform_indices = @transform_1, window_bounds = array<i64: 8, 256>}]} {
    %c0 = arith.constant 0 : index
    %c0_0 = arith.constant 0 : index
    %0 = vector.load %arg1[%c0, %c0_0] : memref<8x256xf32, #tpu.memory_space<vmem>>, vector<8x256xf32>
    %1 = arith.mulf %0, %0 : vector<8x256xf32>
    %cst = arith.constant 0.0356774069 : f32
    %2 = vector.broadcast %cst : f32 to vector<8x256xf32>
    %3 = arith.mulf %2, %1 : vector<8x256xf32>
    %cst_1 = arith.constant 0.797884583 : f32
    %4 = vector.broadcast %cst_1 : f32 to vector<8x256xf32>
    %5 = arith.addf %4, %3 : vector<8x256xf32>
    %6 = arith.mulf %0, %5 : vector<8x256xf32>
    %cst_2 = arith.constant 5.000000e-01 : f32
    %7 = vector.broadcast %cst_2 : f32 to vector<8x256xf32>
    %8 = arith.mulf %7, %0 : vector<8x256xf32>
    %9 = math.tanh %6 : vector<8x256xf32>
    %10 = arith.mulf %8, %9 : vector<8x256xf32>
    %11 = arith.addf %8, %10 : vector<8x256xf32>
    %c0_3 = arith.constant 0 : index
    %c0_4 = arith.constant 0 : index
    %12 = vector.load %arg2[%c0_3, %c0_4] : memref<8x256xf32, #tpu.memory_space<vmem>>, vector<8x256xf32>
    tpu.vector_store %arg2[%c0_3, %c0_4], %11 {strides = array<i32>} : memref<8x256xf32, #tpu.memory_space<vmem>>, vector<8x256xf32>,
    return
  }
  func.func @transform_0(%arg0: i32) -> (i32, i32) {
    %c0_i32 = arith.constant 0 : i32
    %c0_i32_0 = arith.constant 0 : i32
    return %arg0, %c0_i32 : i32, i32
  }
  func.func @transform_1(%arg0: i32) -> (i32, i32) {
    %c0_i32 = arith.constant 0 : i32
    %c0_i32_0 = arith.constant 0 : i32
    return %arg0, %c0_i32 : i32, i32
  }
}

</mosaic_0001>

<bundles_post_ra>
// kernel: tpu_custom_call.1
= control target key start
LH: loop header
LB: loop body
LE: loop exit
PB: predicated region body
PF: predicated region fallthrough
CT: control target
= control target key end

     0   :  { %6 = vsyncpa [#allocation3], 0  ;;  %s146_s0 = inlined_call_operand.hbm [shape: f32[8,256], index: 0, kind: input, shape index: {}]   ;;  %s147_s1 = inlined_call_operand.hbm [shape: f32[8,256], index: 1, kind: output, shape index: {}]  }
   0x1   :  { %7 = vsyncpa [#allocation4], 0  ;;  %s110_s6 = smov [#allocation2]   ;;  %s62_s10 = scalar_lea.hbm %s146_s0, 256 }
   0x2   :  { %s14_s7 = sshll.u32 %s110_s6, 4  ;;  %p63_p0 = scmp.ne.s32.totalorder %s146_s0, %s62_s10  ;;  %s15_s7 = int_to_ptr.vmem [resolvable:$true] %s14_s7 }
   0x3   :  { %p66_p1 = scmp.lt.u32.totalorder %s62_s10, %s146_s0 }
   0x5   :  { %p68_p2 = pnand %p66_p1, %p63_p0 }
   0x7   :  { %71 = shalt.err (!%p68_p2)
}
   0x8   :  { %s72_s15 = scalar_lea.vmem %s15_s7, 256  ;;  %p77_p4 = scmp.lt.s32.totalorder %s15_s7, %s15_s7 }
   0x9   :  { %p73_p3 = scmp.ne.s32.totalorder %s15_s7, %s72_s15  ;;  %p78_p5 = scmp.lt.s32.totalorder %s72_s15, %s72_s15 }
   0xb   :  { %p79_p6 = por %p78_p5, %p77_p4 }
   0xd   :  { %p80_p7 = pnand %p79_p6, %p73_p3 }
   0xf   :  { %83 = shalt.err (!%p80_p7)
}
  0x10   :  { %17 = dma.hbm_to_vmem [thread:$0]  %s146_s0, 256, %s15_s7, [#allocation3]  }
  0x11   :  { %106 = dma.done.wait [#allocation3], 256  }
  0x12   :  { %107 = vsyncadd [#allocation3], 4294967040  ;;  %v21_v0 = vld [vmem:[#allocation2] sm:$0xff]  ;;  %v22_v1 = vld [vmem:[#allocation2 + $0x8] sm:$0xff]  ;;  %s111_s0 = smov [#allocation5]  }
  0x13   :  { %v23_v2 = vmul.f32 %v21_v0, %v21_v0  ;;  %v24_v3 = vmul.f32 %v22_v1, %v22_v1  ;;  %v31_v10 = vmul.f32 0.5, %v21_v0  ;;  %v32_v11 = vmul.f32 0.5, %v22_v1  ;;  %s47_s18 = sshll.u32 %s111_s0, 4  ;;  %s48_s18 = int_to_ptr.vmem [resolvable:$true] %s47_s18 }
  0x14   :  { %s84_s19 = scalar_lea.vmem %s48_s18, 256  ;;  %p89_p9 = scmp.lt.s32.totalorder %s48_s18, %s48_s18 }
  0x15   :  { %v25_v4 = vmul.f32 0.035677407, %v23_v2  ;;  %v26_v5 = vmul.f32 0.035677407, %v24_v3  ;;  %p85_p8 = scmp.ne.s32.totalorder %s48_s18, %s84_s19  ;;  %p90_p10 = scmp.lt.s32.totalorder %s84_s19, %s84_s19 }
  0x17   :  { %v27_v6 = vadd.f32 0.7978846, %v25_v4  ;;  %v28_v7 = vadd.f32 0.7978846, %v26_v5  ;;  %p91_p11 = por %p90_p10, %p89_p9 }
  0x19   :  { %v29_v8 = vmul.f32 %v27_v6, %v21_v0  ;;  %v30_v9 = vmul.f32 %v28_v7, %v22_v1  ;;  %p92_p12 = pnand %p91_p11, %p85_p8 }
  0x1b   :  { %58 = vtanh.f32 %v29_v8 }
  0x1c   :  { %60 = vtanh.f32 %v30_v9 }
  0x25   :  { %v59_v12 = vpop.eup %58 }
  0x26   :  { %v61_v13 = vpop.eup %60  ;;  %v35_v14 = vmul.f32 %v59_v12, %v31_v10 }
  0x27   :  { %v36_v15 = vmul.f32 %v61_v13, %v32_v11 }
  0x28   :  { %v37_v16 = vadd.f32 %v35_v14, %v31_v10 }
  0x29   :  { %v38_v17 = vadd.f32 %v36_v15, %v32_v11 }
  0x2a   :  { %39 = vst [vmem:[#allocation5] sm:$0xff] %v37_v16 }
  0x2b   :  { %40 = vst [vmem:[#allocation5 + $0x8] sm:$0xff] %v38_v17 }
  0x2c   :  { %95 = shalt.err (!%p92_p12)
}
  0x2d   :  { %s96_s22 = scalar_lea.hbm %s147_s1, 256 }
  0x2e   :  { %p97_p13 = scmp.ne.s32.totalorder %s147_s1, %s96_s22  ;;  %p100_p0 = scmp.lt.u32.totalorder %s96_s22, %s147_s1 }
  0x30   :  { %p102_p1 = pnand %p100_p0, %p97_p13 }
  0x32   :  { %105 = shalt.err (!%p102_p1)
}
  0x33   :  { %50 = dma.vmem_to_hbm [thread:$0]  %s48_s18, 256, %s147_s1, [#allocation4]  }
  0x34   :  { %108 = dma.done.wait [#allocation4], 256  }
  0x35   :  { %109 = vsyncadd [#allocation4], 4294967040 }
  0x36   :  { %54 = vsyncpa [#allocation3], 1 }
  0x37   :  { %55 = vsyncpa [#allocation4], 1 }

</bundles_post_ra>
